<compile_context>
chip_gen: v5e
topology: v5e:2x2
jax: 0.10.0
libtpu: 0.0.40
codegen_flags: <defaults>
</compile_context>

<pallas_src>
import jax
import jax.numpy as jnp
from jax.experimental import pallas as pl
from jax.experimental.pallas import tpu as pltpu

# ---------------- static configuration (small synthetic shapes) --------------
B = 2          # batch
N = 8          # number of vertices
E = 12         # number of edges
F_IN = 16      # raw vertex input features (< FEAT, gets zero-padded)
FEAT = 32      # feature_n == output_features_n[-1]
EFEAT = 4      # edge_feat_in feature width (hard-coded "+ 4" in the module)
NUM_LAYERS = 2  # len(output_features_n)
RESNET = True
EPS = 1e-5
DTYPE = jnp.float32


def _single_tensorcore_chip() -> bool:
    """True on single-TC chips (v5e/v6e): collapse the batch grid there.
    Dual-TC chips (v7x/v5p/v4) keep batch as a parallel grid axis so the two
    TensorCores each take batch elements. Wrong guesses only affect perf."""
    try:
        kind = jax.devices()[0].device_kind.lower()
    except Exception:
        return True
    if "lite" in kind:                                   # v5e / v6e "lite" chips
        return True
    if any(t in kind for t in ("v7", "v5p", "v4")):      # dual-TensorCore chips
        return False
    return True


# ------------------------------- Pallas kernel -------------------------------
def _make_kernel(bb):
    """Build a kernel that processes `bb` batch elements per grid step."""

    def kernel(vert_in_ref, ev_ref, evt_ref, efin_ref, mask_ref,
               w_ve_ref, b_ve_ref, w_ev_ref, b_ev_ref, gamma_ref, beta_ref,
               out_ref, cat_scr):
        # ---- per-batch init (static unrolled; bb is 1 or B) ----
        vert_feats = []
        edge_feats = [None] * bb
        for b in range(bb):
            # In-kernel zero-pad of raw vertex features to FEAT columns
            # (replaces the wrapper-side pad + HBM round trip).
            v_in = vert_in_ref[b]                                    # (N, F_IN)
            vert_feats.append(jnp.concatenate(
                [v_in, jnp.zeros((N, FEAT - F_IN), v_in.dtype)], axis=-1))
            # edge_feat_in never changes across layers: park it once in the
            # trailing EFEAT lanes of the fused-concat scratch.
            cat_scr[b, :, FEAT:FEAT + EFEAT] = efin_ref[b]           # (E, EFEAT)

        # ---- static unrolled layer loop ----
        for li in range(NUM_LAYERS):
            # Layer weights read once per layer (not once per batch element).
            w_ve = w_ve_ref[li]          # (F, F)        (stored transposed: x @ W)
            b_ve = b_ve_ref[li]          # (1, F)
            w_ev = w_ev_ref[li]          # (F+EFEAT, F)  == cat([W_a; W_b], axis=0)
            b_ev = b_ev_ref[li]          # (1, F)
            gamma = gamma_ref[li]        # (1, F)
            beta = beta_ref[li]          # (1, F)

            for b in range(bb):
                edge_vert = ev_ref[b]        # (E, N)
                edge_vert_t = evt_ref[b]     # (N, E)  pre-transposed in wrapper
                mask = mask_ref[b]           # (N, 1)

                # ---- gl_ve : vertices -> edges ----
                h = jnp.dot(vert_feats[b], w_ve,
                            preferred_element_type=jnp.float32) + b_ve   # (N, F)
                ef_next = jnp.maximum(
                    jnp.dot(edge_vert, h,
                            preferred_element_type=jnp.float32), 0.0)    # (E, F)
                if RESNET and li > 0:
                    edge_feats[b] = edge_feats[b] + ef_next
                else:
                    edge_feats[b] = ef_next

                # ---- gl_ev : edges -> vertices (fused concat weight) ----
                # cat([edge_feat, edge_feat_in], -1) @ W_ev in ONE dot:
                # edge_feat goes into lanes [0, F); edge_feat_in was already
                # parked in lanes [F, F+EFEAT) before the layer loop.
                cat_scr[b, :, :FEAT] = edge_feats[b]
                h2 = jnp.dot(cat_scr[b], w_ev,
                             preferred_element_type=jnp.float32) + b_ev  # (E, F)
                # vert_next[n, f] = sum_e edge_vert[e, n] * h2[e, f]
                #                 = (edge_vert^T @ h2)[n, f]; the transpose is
                # hoisted to the wrapper, so this is a plain dot (no XLU work).
                vfn = jnp.maximum(
                    jnp.dot(edge_vert_t, h2,
                            preferred_element_type=jnp.float32), 0.0)    # (N, F)

                # ---- MaskedLayerNorm1d over the feature dim, then mask ----
                mu = jnp.mean(vfn, axis=-1, keepdims=True)
                var = jnp.mean((vfn - mu) ** 2, axis=-1, keepdims=True)
                vfn = (vfn - mu) * jax.lax.rsqrt(var + EPS)   # EUP rsqrt
                vfn = (vfn * gamma + beta) * mask

                # ---- residual on vertices ----
                if RESNET:
                    vert_feats[b] = vfn + vert_feats[b]
                else:
                    vert_feats[b] = vfn

        for b in range(bb):
            out_ref[b] = vert_feats[b].astype(out_ref.dtype)

    return kernel


# --------------------------------- wrapper -----------------------------------
def ve_extra_res_layers(vert_feat_in, edge_vert_g, edge_feat_in, input_mask, params):
    """vert_feat_in: [B,N,F_IN], edge_vert_g: [B,1,E,N] (GS=1), edge_feat_in: [B,E,4],
    input_mask: [B,N] (0/1 floats)."""
    w_ve, b_ve, w_eva, w_evb, b_ev, gamma, beta = params
    L = NUM_LAYERS

    edge_vert = edge_vert_g[:, 0]                        # squeeze GS=1 -> [B, E, N]
    # Hoisted transpose: build edge_vert^T once here instead of a per-layer
    # in-kernel transpose on the critical path.
    edge_vert_t = jnp.swapaxes(edge_vert, 1, 2)          # [B, N, E]
    mask = input_mask[..., None].astype(DTYPE)           # [B, N, 1]
    # Fused gl_ev weight: cat([ef, efin], -1) @ W == ef @ W_a + efin @ W_b
    # with W = [W_a ; W_b]  (both stored transposed for x @ W).
    w_ev_cat = jnp.concatenate([w_eva, w_evb], axis=1)   # [L, FEAT+EFEAT, FEAT]

    # Batch-grid policy (see header): collapse on single-TC, parallel on dual-TC.
    bb = B if _single_tensorcore_chip() else 1
    steps = B // bb

    kernel = _make_kernel(bb)

    batched = lambda shp: pl.BlockSpec(shp, lambda i: (i, 0, 0))
    shared = lambda shp: pl.BlockSpec(shp, lambda i: (0, 0, 0))

    return pl.pallas_call(
        kernel,
        out_shape=jax.ShapeDtypeStruct((B, N, FEAT), DTYPE),
        grid_spec=pltpu.PrefetchScalarGridSpec(
            num_scalar_prefetch=0,
            grid=(steps,),
            in_specs=[
                batched((bb, N, F_IN)),           # raw vert features (padded in-kernel)
                batched((bb, E, N)),              # edge_vert
                batched((bb, N, E)),              # edge_vert^T (hoisted transpose)
                batched((bb, E, EFEAT)),          # edge_feat_in
                batched((bb, N, 1)),              # mask
                # Constant index_maps: the pipeline does not re-DMA these across
                # grid steps, so no extra buffering knobs are needed.
                shared((L, FEAT, FEAT)),          # W_ve
                shared((L, 1, FEAT)),             # b_ve
                shared((L, FEAT + EFEAT, FEAT)),  # W_ev (fused [W_a; W_b])
                shared((L, 1, FEAT)),             # b_ev
                shared((L, 1, FEAT)),             # layer-norm gamma
                shared((L, 1, FEAT)),             # layer-norm beta
            ],
            out_specs=batched((bb, N, FEAT)),
            scratch_shapes=[pltpu.VMEM((bb, E, FEAT + EFEAT), jnp.float32)],
        ),
        compiler_params=pltpu.CompilerParams(dimension_semantics=("parallel",)),
    )(vert_feat_in, edge_vert, edge_vert_t, edge_feat_in, mask,
      w_ve, b_ve, w_ev_cat, b_ev, gamma, beta)


# ---------------------------- pure-JAX reference ------------------------------
def reference(vert_feat_in, edge_vert_g, edge_feat_in, input_mask, params):
    w_ve, b_ve, w_eva, w_evb, b_ev, gamma, beta = params
    vert_feat = jnp.pad(vert_feat_in,
                        ((0, 0), (0, 0), (0, FEAT - vert_feat_in.shape[-1])))
    edge_vert = edge_vert_g[:, 0]
    mask = input_mask[..., None].astype(DTYPE)
    hp = jax.lax.Precision.HIGHEST
    edge_feat = None
    for li in range(NUM_LAYERS):
        h = jnp.einsum('bnf,fg->bng', vert_feat, w_ve[li], precision=hp) + b_ve[li]
        ef_next = jnp.maximum(
            jnp.einsum('ben,bng->beg', edge_vert, h, precision=hp), 0.0)
        edge_feat = edge_feat + ef_next if (RESNET and li > 0) else ef_next
        h2 = (jnp.einsum('bef,fg->beg', edge_feat, w_eva[li], precision=hp)
              + jnp.einsum('bef,fg->beg', edge_feat_in, w_evb[li], precision=hp)
              + b_ev[li])
        vfn = jnp.maximum(
            jnp.einsum('ben,beg->bng', edge_vert, h2, precision=hp), 0.0)
        mu = vfn.mean(-1, keepdims=True)
        var = ((vfn - mu) ** 2).mean(-1, keepdims=True)
        vfn = (vfn - mu) / jnp.sqrt(var + EPS) * gamma[li] + beta[li]
        vfn = vfn * mask
        vert_feat = vfn + vert_feat if RESNET else vfn
    return vert_feat


# --------------------------------- main ---------------------------------------
if __name__ == "__main__":
    key = jax.random.PRNGKey(0)
    ks = jax.random.split(key, 12)

    # Deterministic synthetic parameters (shapes per the module's __init__:
    # nn.Linear(F, F) for gl_ve and nn.Linear(F+4, F) for gl_ev, per layer).
    scale = 0.2
    w_ve = scale * jax.random.normal(ks[0], (NUM_LAYERS, FEAT, FEAT), DTYPE)
    b_ve = scale * jax.random.normal(ks[1], (NUM_LAYERS, 1, FEAT), DTYPE)
    w_eva = scale * jax.random.normal(ks[2], (NUM_LAYERS, FEAT, FEAT), DTYPE)
    w_evb = scale * jax.random.normal(ks[3], (NUM_LAYERS, EFEAT, FEAT), DTYPE)
    b_ev = scale * jax.random.normal(ks[4], (NUM_LAYERS, 1, FEAT), DTYPE)
    gamma = jnp.ones((NUM_LAYERS, 1, FEAT), DTYPE) \
        + 0.05 * jax.random.normal(ks[5], (NUM_LAYERS, 1, FEAT), DTYPE)
    beta = 0.05 * jax.random.normal(ks[6], (NUM_LAYERS, 1, FEAT), DTYPE)
    params = (w_ve, b_ve, w_eva, w_evb, b_ev, gamma, beta)

    # Deterministic synthetic inputs.
    vert_feat_in = jax.random.normal(ks[7], (B, N, F_IN), DTYPE)
    edge_vert_g = (jax.random.uniform(ks[8], (B, 1, E, N)) > 0.6).astype(DTYPE)
    edge_feat_in = jax.random.normal(ks[9], (B, E, EFEAT), DTYPE)
    input_mask = (jax.random.uniform(ks[10], (B, N)) > 0.2).astype(DTYPE)

    out = ve_extra_res_layers(vert_feat_in, edge_vert_g, edge_feat_in,
                              input_mask, params)
    out = jax.block_until_ready(out)

    ref = jax.block_until_ready(
        reference(vert_feat_in, edge_vert_g, edge_feat_in, input_mask, params))

    assert out.shape == (B, N, FEAT) and out.dtype == DTYPE
    assert jnp.allclose(out, ref, atol=1e-3, rtol=1e-3), \
        f"max abs err {jnp.max(jnp.abs(out - ref))}"
    print("KERNEL_OK")
</pallas_src>

<mosaic_0001>
module attributes {stable_mosaic.version = 11 : i64} {
  func.func @kernel(%arg0: i32, %arg1: memref<2x8x16xf32, #tpu.memory_space<vmem>>, %arg2: memref<2x12x8xf32, #tpu.memory_space<vmem>>, %arg3: memref<2x8x12xf32, #tpu.memory_space<vmem>>, %arg4: memref<2x12x4xf32, #tpu.memory_space<vmem>>, %arg5: memref<2x8x1xf32, #tpu.memory_space<vmem>>, %arg6: memref<2x32x32xf32, #tpu.memory_space<vmem>>, %arg7: memref<2x1x32xf32, #tpu.memory_space<vmem>>, %arg8: memref<2x36x32xf32, #tpu.memory_space<vmem>>, %arg9: memref<2x1x32xf32, #tpu.memory_space<vmem>>, %arg10: memref<2x1x32xf32, #tpu.memory_space<vmem>>, %arg11: memref<2x1x32xf32, #tpu.memory_space<vmem>>, %arg12: memref<2x8x32xf32, #tpu.memory_space<vmem>>, %arg13: memref<2x12x36xf32, #tpu.memory_space<vmem>>) attributes {dimension_semantics = [#tpu.dimension_semantics<parallel>], iteration_bounds = array<i64: 1>, scalar_prefetch = 0 : i64, scratch_operands = 1 : i64, tpu.core_type = #tpu.core_type<tc>, window_params = [{transform_indices = @transform_0, window_bounds = array<i64: 2, 8, 16>}, {transform_indices = @transform_1, window_bounds = array<i64: 2, 12, 8>}, {transform_indices = @transform_2, window_bounds = array<i64: 2, 8, 12>}, {transform_indices = @transform_3, window_bounds = array<i64: 2, 12, 4>}, {transform_indices = @transform_4, window_bounds = array<i64: 2, 8, 1>}, {pipeline_mode = #tpu.pipeline_mode<synchronous>, transform_indices = @transform_5, window_bounds = array<i64: 2, 32, 32>}, {pipeline_mode = #tpu.pipeline_mode<synchronous>, transform_indices = @transform_6, window_bounds = array<i64: 2, 1, 32>}, {pipeline_mode = #tpu.pipeline_mode<synchronous>, transform_indices = @transform_7, window_bounds = array<i64: 2, 36, 32>}, {pipeline_mode = #tpu.pipeline_mode<synchronous>, transform_indices = @transform_8, window_bounds = array<i64: 2, 1, 32>}, {pipeline_mode = #tpu.pipeline_mode<synchronous>, transform_indices = @transform_9, window_bounds = array<i64: 2, 1, 32>}, {pipeline_mode = #tpu.pipeline_mode<synchronous>, transform_indices = @transform_10, window_bounds = array<i64: 2, 1, 32>}, {transform_indices = @transform_11, window_bounds = array<i64: 2, 8, 32>}]} {
    %c0 = arith.constant 0 : index
    %c0_0 = arith.constant 0 : index
    %c0_1 = arith.constant 0 : index
    %0 = vector.load %arg1[%c0, %c0_0, %c0_1] : memref<2x8x16xf32, #tpu.memory_space<vmem>>, vector<1x8x16xf32>
    %1 = vector.shape_cast %0 : vector<1x8x16xf32> to vector<8x16xf32>
    %cst = arith.constant 0.000000e+00 : f32
    %2 = vector.broadcast %cst : f32 to vector<8x16xf32>
    %3 = tpu.concatenate %1, %2 in 1 : vector<8x16xf32>, vector<8x16xf32> -> vector<8x32xf32>
    %c0_2 = arith.constant 0 : index
    %c0_3 = arith.constant 0 : index
    %c0_4 = arith.constant 0 : index
    %4 = vector.load %arg4[%c0_2, %c0_3, %c0_4] : memref<2x12x4xf32, #tpu.memory_space<vmem>>, vector<1x12x4xf32>
    %5 = vector.shape_cast %4 : vector<1x12x4xf32> to vector<12x4xf32>
    %c0_5 = arith.constant 0 : index
    %c0_6 = arith.constant 0 : index
    %c32 = arith.constant 32 : index
    %6 = vector.load %arg13[%c0_5, %c0_6, %c32] : memref<2x12x36xf32, #tpu.memory_space<vmem>>, vector<1x12x4xf32>
    %7 = vector.shape_cast %6 : vector<1x12x4xf32> to vector<12x4xf32>
    %8 = vector.shape_cast %5 : vector<12x4xf32> to vector<1x12x4xf32>
    tpu.vector_store %arg13[%c0_5, %c0_6, %c32], %8 {strides = array<i32>} : memref<2x12x36xf32, #tpu.memory_space<vmem>>, vector<1x12x4xf32>,
    %c1 = arith.constant 1 : index
    %c0_7 = arith.constant 0 : index
    %c0_8 = arith.constant 0 : index
    %9 = vector.load %arg1[%c1, %c0_7, %c0_8] : memref<2x8x16xf32, #tpu.memory_space<vmem>>, vector<1x8x16xf32>
    %10 = vector.shape_cast %9 : vector<1x8x16xf32> to vector<8x16xf32>
    %cst_9 = arith.constant 0.000000e+00 : f32
    %11 = vector.broadcast %cst_9 : f32 to vector<8x16xf32>
    %12 = tpu.concatenate %10, %11 in 1 : vector<8x16xf32>, vector<8x16xf32> -> vector<8x32xf32>
    %c1_10 = arith.constant 1 : index
    %c0_11 = arith.constant 0 : index
    %c0_12 = arith.constant 0 : index
    %13 = vector.load %arg4[%c1_10, %c0_11, %c0_12] : memref<2x12x4xf32, #tpu.memory_space<vmem>>, vector<1x12x4xf32>
    %14 = vector.shape_cast %13 : vector<1x12x4xf32> to vector<12x4xf32>
    %c1_13 = arith.constant 1 : index
    %c0_14 = arith.constant 0 : index
    %c32_15 = arith.constant 32 : index
    %15 = vector.load %arg13[%c1_13, %c0_14, %c32_15] : memref<2x12x36xf32, #tpu.memory_space<vmem>>, vector<1x12x4xf32>
    %16 = vector.shape_cast %15 : vector<1x12x4xf32> to vector<12x4xf32>
    %17 = vector.shape_cast %14 : vector<12x4xf32> to vector<1x12x4xf32>
    tpu.vector_store %arg13[%c1_13, %c0_14, %c32_15], %17 {strides = array<i32>} : memref<2x12x36xf32, #tpu.memory_space<vmem>>, vector<1x12x4xf32>,
    %c0_16 = arith.constant 0 : index
    %c0_17 = arith.constant 0 : index
    %c0_18 = arith.constant 0 : index
    %18 = vector.load %arg6[%c0_16, %c0_17, %c0_18] : memref<2x32x32xf32, #tpu.memory_space<vmem>>, vector<1x32x32xf32>
    %19 = vector.shape_cast %18 : vector<1x32x32xf32> to vector<32x32xf32>
    %c0_19 = arith.constant 0 : index
    %c0_20 = arith.constant 0 : index
    %c0_21 = arith.constant 0 : index
    %20 = vector.load %arg7[%c0_19, %c0_20, %c0_21] : memref<2x1x32xf32, #tpu.memory_space<vmem>>, vector<1x1x32xf32>
    %21 = vector.shape_cast %20 : vector<1x1x32xf32> to vector<1x32xf32>
    %c0_22 = arith.constant 0 : index
    %c0_23 = arith.constant 0 : index
    %c0_24 = arith.constant 0 : index
    %22 = vector.load %arg8[%c0_22, %c0_23, %c0_24] : memref<2x36x32xf32, #tpu.memory_space<vmem>>, vector<1x36x32xf32>
    %23 = vector.shape_cast %22 : vector<1x36x32xf32> to vector<36x32xf32>
    %c0_25 = arith.constant 0 : index
    %c0_26 = arith.constant 0 : index
    %c0_27 = arith.constant 0 : index
    %24 = vector.load %arg9[%c0_25, %c0_26, %c0_27] : memref<2x1x32xf32, #tpu.memory_space<vmem>>, vector<1x1x32xf32>
    %25 = vector.shape_cast %24 : vector<1x1x32xf32> to vector<1x32xf32>
    %c0_28 = arith.constant 0 : index
    %c0_29 = arith.constant 0 : index
    %c0_30 = arith.constant 0 : index
    %26 = vector.load %arg10[%c0_28, %c0_29, %c0_30] : memref<2x1x32xf32, #tpu.memory_space<vmem>>, vector<1x1x32xf32>
    %27 = vector.shape_cast %26 : vector<1x1x32xf32> to vector<1x32xf32>
    %c0_31 = arith.constant 0 : index
    %c0_32 = arith.constant 0 : index
    %c0_33 = arith.constant 0 : index
    %28 = vector.load %arg11[%c0_31, %c0_32, %c0_33] : memref<2x1x32xf32, #tpu.memory_space<vmem>>, vector<1x1x32xf32>
    %29 = vector.shape_cast %28 : vector<1x1x32xf32> to vector<1x32xf32>
    %c0_34 = arith.constant 0 : index
    %c0_35 = arith.constant 0 : index
    %c0_36 = arith.constant 0 : index
    %30 = vector.load %arg2[%c0_34, %c0_35, %c0_36] : memref<2x12x8xf32, #tpu.memory_space<vmem>>, vector<1x12x8xf32>
    %31 = vector.shape_cast %30 : vector<1x12x8xf32> to vector<12x8xf32>
    %c0_37 = arith.constant 0 : index
    %c0_38 = arith.constant 0 : index
    %c0_39 = arith.constant 0 : index
    %32 = vector.load %arg3[%c0_37, %c0_38, %c0_39] : memref<2x8x12xf32, #tpu.memory_space<vmem>>, vector<1x8x12xf32>
    %33 = vector.shape_cast %32 : vector<1x8x12xf32> to vector<8x12xf32>
    %c0_40 = arith.constant 0 : index
    %c0_41 = arith.constant 0 : index
    %c0_42 = arith.constant 0 : index
    %34 = vector.load %arg5[%c0_40, %c0_41, %c0_42] : memref<2x8x1xf32, #tpu.memory_space<vmem>>, vector<1x8x1xf32>
    %35 = vector.shape_cast %34 : vector<1x8x1xf32> to vector<8x1xf32>
    %cst_43 = arith.constant dense<0.000000e+00> : vector<8x32xf32>
    %36 = tpu.matmul %3, %19, %cst_43 {dimension_numbers = #tpu.dot_dimension_numbers<[1], [0], [0], [1], [0, 0, 1, 1], [], []>} : vector<8x32xf32>, vector<32x32xf32>, vector<8x32xf32> -> vector<8x32xf32>
    %37 = vector.broadcast %21 : vector<1x32xf32> to vector<8x32xf32>
    %38 = arith.addf %36, %37 : vector<8x32xf32>
    %cst_44 = arith.constant dense<0.000000e+00> : vector<12x32xf32>
    %39 = tpu.matmul %31, %38, %cst_44 {dimension_numbers = #tpu.dot_dimension_numbers<[1], [0], [0], [1], [0, 0, 1, 1], [], []>} : vector<12x8xf32>, vector<8x32xf32>, vector<12x32xf32> -> vector<12x32xf32>
    %cst_45 = arith.constant 0.000000e+00 : f32
    %40 = vector.broadcast %cst_45 : f32 to vector<12x32xf32>
    %41 = arith.maximumf %39, %40 : vector<12x32xf32>
    %c0_46 = arith.constant 0 : index
    %c0_47 = arith.constant 0 : index
    %c0_48 = arith.constant 0 : index
    %42 = vector.load %arg13[%c0_46, %c0_47, %c0_48] : memref<2x12x36xf32, #tpu.memory_space<vmem>>, vector<1x12x32xf32>
    %43 = vector.shape_cast %42 : vector<1x12x32xf32> to vector<12x32xf32>
    %44 = vector.shape_cast %41 : vector<12x32xf32> to vector<1x12x32xf32>
    tpu.vector_store %arg13[%c0_46, %c0_47, %c0_48], %44 {strides = array<i32>} : memref<2x12x36xf32, #tpu.memory_space<vmem>>, vector<1x12x32xf32>,
    %c0_49 = arith.constant 0 : index
    %c0_50 = arith.constant 0 : index
    %c0_51 = arith.constant 0 : index
    %45 = vector.load %arg13[%c0_49, %c0_50, %c0_51] : memref<2x12x36xf32, #tpu.memory_space<vmem>>, vector<1x12x36xf32>
    %46 = vector.shape_cast %45 : vector<1x12x36xf32> to vector<12x36xf32>
    %cst_52 = arith.constant dense<0.000000e+00> : vector<12x32xf32>
    %47 = tpu.matmul %46, %23, %cst_52 {dimension_numbers = #tpu.dot_dimension_numbers<[1], [0], [0], [1], [0, 0, 1, 1], [], []>} : vector<12x36xf32>, vector<36x32xf32>, vector<12x32xf32> -> vector<12x32xf32>
    %48 = vector.broadcast %25 : vector<1x32xf32> to vector<12x32xf32>
    %49 = arith.addf %47, %48 : vector<12x32xf32>
    %cst_53 = arith.constant dense<0.000000e+00> : vector<8x32xf32>
    %50 = tpu.matmul %33, %49, %cst_53 {dimension_numbers = #tpu.dot_dimension_numbers<[1], [0], [0], [1], [0, 0, 1, 1], [], []>} : vector<8x12xf32>, vector<12x32xf32>, vector<8x32xf32> -> vector<8x32xf32>
    %cst_54 = arith.constant 0.000000e+00 : f32
    %51 = vector.broadcast %cst_54 : f32 to vector<8x32xf32>
    %52 = arith.maximumf %50, %51 : vector<8x32xf32>
    %cst_55 = arith.constant dense<0.000000e+00> : vector<8xf32>
    %53 = vector.multi_reduction <add>, %52, %cst_55 [1] : vector<8x32xf32> to vector<8xf32>
    %54 = vector.shape_cast %53 : vector<8xf32> to vector<8x1xf32>
    %cst_56 = arith.constant 3.200000e+01 : f32
    %55 = vector.broadcast %cst_56 : f32 to vector<8x1xf32>
    %56 = arith.divf %54, %55 : vector<8x1xf32>
    %57 = vector.broadcast %56 : vector<8x1xf32> to vector<8x32xf32>
    %58 = arith.subf %52, %57 : vector<8x32xf32>
    %59 = arith.mulf %58, %58 : vector<8x32xf32>
    %cst_57 = arith.constant dense<0.000000e+00> : vector<8xf32>
    %60 = vector.multi_reduction <add>, %59, %cst_57 [1] : vector<8x32xf32> to vector<8xf32>
    %61 = vector.shape_cast %60 : vector<8xf32> to vector<8x1xf32>
    %cst_58 = arith.constant 3.200000e+01 : f32
    %62 = vector.broadcast %cst_58 : f32 to vector<8x1xf32>
    %63 = arith.divf %61, %62 : vector<8x1xf32>
    %64 = vector.broadcast %56 : vector<8x1xf32> to vector<8x32xf32>
    %65 = arith.subf %52, %64 : vector<8x32xf32>
    %cst_59 = arith.constant 9.99999974E-6 : f32
    %66 = vector.broadcast %cst_59 : f32 to vector<8x1xf32>
    %67 = arith.addf %63, %66 : vector<8x1xf32>
    %68 = math.rsqrt %67 : vector<8x1xf32>
    %69 = vector.broadcast %68 : vector<8x1xf32> to vector<8x32xf32>
    %70 = arith.mulf %65, %69 : vector<8x32xf32>
    %71 = vector.broadcast %27 : vector<1x32xf32> to vector<8x32xf32>
    %72 = arith.mulf %70, %71 : vector<8x32xf32>
    %73 = vector.broadcast %29 : vector<1x32xf32> to vector<8x32xf32>
    %74 = arith.addf %72, %73 : vector<8x32xf32>
    %75 = vector.broadcast %35 : vector<8x1xf32> to vector<8x32xf32>
    %76 = arith.mulf %74, %75 : vector<8x32xf32>
    %77 = arith.addf %76, %3 : vector<8x32xf32>
    %c1_60 = arith.constant 1 : index
    %c0_61 = arith.constant 0 : index
    %c0_62 = arith.constant 0 : index
    %78 = vector.load %arg2[%c1_60, %c0_61, %c0_62] : memref<2x12x8xf32, #tpu.memory_space<vmem>>, vector<1x12x8xf32>
    %79 = vector.shape_cast %78 : vector<1x12x8xf32> to vector<12x8xf32>
    %c1_63 = arith.constant 1 : index
    %c0_64 = arith.constant 0 : index
    %c0_65 = arith.constant 0 : index
    %80 = vector.load %arg3[%c1_63, %c0_64, %c0_65] : memref<2x8x12xf32, #tpu.memory_space<vmem>>, vector<1x8x12xf32>
    %81 = vector.shape_cast %80 : vector<1x8x12xf32> to vector<8x12xf32>
    %c1_66 = arith.constant 1 : index
    %c0_67 = arith.constant 0 : index
    %c0_68 = arith.constant 0 : index
    %82 = vector.load %arg5[%c1_66, %c0_67, %c0_68] : memref<2x8x1xf32, #tpu.memory_space<vmem>>, vector<1x8x1xf32>
    %83 = vector.shape_cast %82 : vector<1x8x1xf32> to vector<8x1xf32>
    %cst_69 = arith.constant dense<0.000000e+00> : vector<8x32xf32>
    %84 = tpu.matmul %12, %19, %cst_69 {dimension_numbers = #tpu.dot_dimension_numbers<[1], [0], [0], [1], [0, 0, 1, 1], [], []>} : vector<8x32xf32>, vector<32x32xf32>, vector<8x32xf32> -> vector<8x32xf32>
    %85 = vector.broadcast %21 : vector<1x32xf32> to vector<8x32xf32>
    %86 = arith.addf %84, %85 : vector<8x32xf32>
    %cst_70 = arith.constant dense<0.000000e+00> : vector<12x32xf32>
    %87 = tpu.matmul %79, %86, %cst_70 {dimension_numbers = #tpu.dot_dimension_numbers<[1], [0], [0], [1], [0, 0, 1, 1], [], []>} : vector<12x8xf32>, vector<8x32xf32>, vector<12x32xf32> -> vector<12x32xf32>
    %cst_71 = arith.constant 0.000000e+00 : f32
    %88 = vector.broadcast %cst_71 : f32 to vector<12x32xf32>
    %89 = arith.maximumf %87, %88 : vector<12x32xf32>
    %c1_72 = arith.constant 1 : index
    %c0_73 = arith.constant 0 : index
    %c0_74 = arith.constant 0 : index
    %90 = vector.load %arg13[%c1_72, %c0_73, %c0_74] : memref<2x12x36xf32, #tpu.memory_space<vmem>>, vector<1x12x32xf32>
    %91 = vector.shape_cast %90 : vector<1x12x32xf32> to vector<12x32xf32>
    %92 = vector.shape_cast %89 : vector<12x32xf32> to vector<1x12x32xf32>
    tpu.vector_store %arg13[%c1_72, %c0_73, %c0_74], %92 {strides = array<i32>} : memref<2x12x36xf32, #tpu.memory_space<vmem>>, vector<1x12x32xf32>,
    %c1_75 = arith.constant 1 : index
    %c0_76 = arith.constant 0 : index
    %c0_77 = arith.constant 0 : index
    %93 = vector.load %arg13[%c1_75, %c0_76, %c0_77] : memref<2x12x36xf32, #tpu.memory_space<vmem>>, vector<1x12x36xf32>
    %94 = vector.shape_cast %93 : vector<1x12x36xf32> to vector<12x36xf32>
    %cst_78 = arith.constant dense<0.000000e+00> : vector<12x32xf32>
    %95 = tpu.matmul %94, %23, %cst_78 {dimension_numbers = #tpu.dot_dimension_numbers<[1], [0], [0], [1], [0, 0, 1, 1], [], []>} : vector<12x36xf32>, vector<36x32xf32>, vector<12x32xf32> -> vector<12x32xf32>
    %96 = vector.broadcast %25 : vector<1x32xf32> to vector<12x32xf32>
    %97 = arith.addf %95, %96 : vector<12x32xf32>
    %cst_79 = arith.constant dense<0.000000e+00> : vector<8x32xf32>
    %98 = tpu.matmul %81, %97, %cst_79 {dimension_numbers = #tpu.dot_dimension_numbers<[1], [0], [0], [1], [0, 0, 1, 1], [], []>} : vector<8x12xf32>, vector<12x32xf32>, vector<8x32xf32> -> vector<8x32xf32>
    %cst_80 = arith.constant 0.000000e+00 : f32
    %99 = vector.broadcast %cst_80 : f32 to vector<8x32xf32>
    %100 = arith.maximumf %98, %99 : vector<8x32xf32>
    %cst_81 = arith.constant dense<0.000000e+00> : vector<8xf32>
    %101 = vector.multi_reduction <add>, %100, %cst_81 [1] : vector<8x32xf32> to vector<8xf32>
    %102 = vector.shape_cast %101 : vector<8xf32> to vector<8x1xf32>
    %cst_82 = arith.constant 3.200000e+01 : f32
    %103 = vector.broadcast %cst_82 : f32 to vector<8x1xf32>
    %104 = arith.divf %102, %103 : vector<8x1xf32>
    %105 = vector.broadcast %104 : vector<8x1xf32> to vector<8x32xf32>
    %106 = arith.subf %100, %105 : vector<8x32xf32>
    %107 = arith.mulf %106, %106 : vector<8x32xf32>
    %cst_83 = arith.constant dense<0.000000e+00> : vector<8xf32>
    %108 = vector.multi_reduction <add>, %107, %cst_83 [1] : vector<8x32xf32> to vector<8xf32>
    %109 = vector.shape_cast %108 : vector<8xf32> to vector<8x1xf32>
    %cst_84 = arith.constant 3.200000e+01 : f32
    %110 = vector.broadcast %cst_84 : f32 to vector<8x1xf32>
    %111 = arith.divf %109, %110 : vector<8x1xf32>
    %112 = vector.broadcast %104 : vector<8x1xf32> to vector<8x32xf32>
    %113 = arith.subf %100, %112 : vector<8x32xf32>
    %cst_85 = arith.constant 9.99999974E-6 : f32
    %114 = vector.broadcast %cst_85 : f32 to vector<8x1xf32>
    %115 = arith.addf %111, %114 : vector<8x1xf32>
    %116 = math.rsqrt %115 : vector<8x1xf32>
    %117 = vector.broadcast %116 : vector<8x1xf32> to vector<8x32xf32>
    %118 = arith.mulf %113, %117 : vector<8x32xf32>
    %119 = vector.broadcast %27 : vector<1x32xf32> to vector<8x32xf32>
    %120 = arith.mulf %118, %119 : vector<8x32xf32>
    %121 = vector.broadcast %29 : vector<1x32xf32> to vector<8x32xf32>
    %122 = arith.addf %120, %121 : vector<8x32xf32>
    %123 = vector.broadcast %83 : vector<8x1xf32> to vector<8x32xf32>
    %124 = arith.mulf %122, %123 : vector<8x32xf32>
    %125 = arith.addf %124, %12 : vector<8x32xf32>
    %c1_86 = arith.constant 1 : index
    %c0_87 = arith.constant 0 : index
    %c0_88 = arith.constant 0 : index
    %126 = vector.load %arg6[%c1_86, %c0_87, %c0_88] : memref<2x32x32xf32, #tpu.memory_space<vmem>>, vector<1x32x32xf32>
    %127 = vector.shape_cast %126 : vector<1x32x32xf32> to vector<32x32xf32>
    %c1_89 = arith.constant 1 : index
    %c0_90 = arith.constant 0 : index
    %c0_91 = arith.constant 0 : index
    %128 = vector.load %arg7[%c1_89, %c0_90, %c0_91] : memref<2x1x32xf32, #tpu.memory_space<vmem>>, vector<1x1x32xf32>
    %129 = vector.shape_cast %128 : vector<1x1x32xf32> to vector<1x32xf32>
    %c1_92 = arith.constant 1 : index
    %c0_93 = arith.constant 0 : index
    %c0_94 = arith.constant 0 : index
    %130 = vector.load %arg8[%c1_92, %c0_93, %c0_94] : memref<2x36x32xf32, #tpu.memory_space<vmem>>, vector<1x36x32xf32>
    %131 = vector.shape_cast %130 : vector<1x36x32xf32> to vector<36x32xf32>
    %c1_95 = arith.constant 1 : index
    %c0_96 = arith.constant 0 : index
    %c0_97 = arith.constant 0 : index
    %132 = vector.load %arg9[%c1_95, %c0_96, %c0_97] : memref<2x1x32xf32, #tpu.memory_space<vmem>>, vector<1x1x32xf32>
    %133 = vector.shape_cast %132 : vector<1x1x32xf32> to vector<1x32xf32>
    %c1_98 = arith.constant 1 : index
    %c0_99 = arith.constant 0 : index
    %c0_100 = arith.constant 0 : index
    %134 = vector.load %arg10[%c1_98, %c0_99, %c0_100] : memref<2x1x32xf32, #tpu.memory_space<vmem>>, vector<1x1x32xf32>
    %135 = vector.shape_cast %134 : vector<1x1x32xf32> to vector<1x32xf32>
    %c1_101 = arith.constant 1 : index
    %c0_102 = arith.constant 0 : index
    %c0_103 = arith.constant 0 : index
    %136 = vector.load %arg11[%c1_101, %c0_102, %c0_103] : memref<2x1x32xf32, #tpu.memory_space<vmem>>, vector<1x1x32xf32>
    %137 = vector.shape_cast %136 : vector<1x1x32xf32> to vector<1x32xf32>
    %c0_104 = arith.constant 0 : index
    %c0_105 = arith.constant 0 : index
    %c0_106 = arith.constant 0 : index
    %138 = vector.load %arg2[%c0_104, %c0_105, %c0_106] : memref<2x12x8xf32, #tpu.memory_space<vmem>>, vector<1x12x8xf32>
    %139 = vector.shape_cast %138 : vector<1x12x8xf32> to vector<12x8xf32>
    %c0_107 = arith.constant 0 : index
    %c0_108 = arith.constant 0 : index
    %c0_109 = arith.constant 0 : index
    %140 = vector.load %arg3[%c0_107, %c0_108, %c0_109] : memref<2x8x12xf32, #tpu.memory_space<vmem>>, vector<1x8x12xf32>
    %141 = vector.shape_cast %140 : vector<1x8x12xf32> to vector<8x12xf32>
    %c0_110 = arith.constant 0 : index
    %c0_111 = arith.constant 0 : index
    %c0_112 = arith.constant 0 : index
    %142 = vector.load %arg5[%c0_110, %c0_111, %c0_112] : memref<2x8x1xf32, #tpu.memory_space<vmem>>, vector<1x8x1xf32>
    %143 = vector.shape_cast %142 : vector<1x8x1xf32> to vector<8x1xf32>
    %cst_113 = arith.constant dense<0.000000e+00> : vector<8x32xf32>
    %144 = tpu.matmul %77, %127, %cst_113 {dimension_numbers = #tpu.dot_dimension_numbers<[1], [0], [0], [1], [0, 0, 1, 1], [], []>} : vector<8x32xf32>, vector<32x32xf32>, vector<8x32xf32> -> vector<8x32xf32>
    %145 = vector.broadcast %129 : vector<1x32xf32> to vector<8x32xf32>
    %146 = arith.addf %144, %145 : vector<8x32xf32>
    %cst_114 = arith.constant dense<0.000000e+00> : vector<12x32xf32>
    %147 = tpu.matmul %139, %146, %cst_114 {dimension_numbers = #tpu.dot_dimension_numbers<[1], [0], [0], [1], [0, 0, 1, 1], [], []>} : vector<12x8xf32>, vector<8x32xf32>, vector<12x32xf32> -> vector<12x32xf32>
    %cst_115 = arith.constant 0.000000e+00 : f32
    %148 = vector.broadcast %cst_115 : f32 to vector<12x32xf32>
    %149 = arith.maximumf %147, %148 : vector<12x32xf32>
    %150 = arith.addf %41, %149 : vector<12x32xf32>
    %c0_116 = arith.constant 0 : index
    %c0_117 = arith.constant 0 : index
    %c0_118 = arith.constant 0 : index
    %151 = vector.load %arg13[%c0_116, %c0_117, %c0_118] : memref<2x12x36xf32, #tpu.memory_space<vmem>>, vector<1x12x32xf32>
    %152 = vector.shape_cast %151 : vector<1x12x32xf32> to vector<12x32xf32>
    %153 = vector.shape_cast %150 : vector<12x32xf32> to vector<1x12x32xf32>
    tpu.vector_store %arg13[%c0_116, %c0_117, %c0_118], %153 {strides = array<i32>} : memref<2x12x36xf32, #tpu.memory_space<vmem>>, vector<1x12x32xf32>,
    %c0_119 = arith.constant 0 : index
    %c0_120 = arith.constant 0 : index
    %c0_121 = arith.constant 0 : index
    %154 = vector.load %arg13[%c0_119, %c0_120, %c0_121] : memref<2x12x36xf32, #tpu.memory_space<vmem>>, vector<1x12x36xf32>
    %155 = vector.shape_cast %154 : vector<1x12x36xf32> to vector<12x36xf32>
    %cst_122 = arith.constant dense<0.000000e+00> : vector<12x32xf32>
    %156 = tpu.matmul %155, %131, %cst_122 {dimension_numbers = #tpu.dot_dimension_numbers<[1], [0], [0], [1], [0, 0, 1, 1], [], []>} : vector<12x36xf32>, vector<36x32xf32>, vector<12x32xf32> -> vector<12x32xf32>
    %157 = vector.broadcast %133 : vector<1x32xf32> to vector<12x32xf32>
    %158 = arith.addf %156, %157 : vector<12x32xf32>
    %cst_123 = arith.constant dense<0.000000e+00> : vector<8x32xf32>
    %159 = tpu.matmul %141, %158, %cst_123 {dimension_numbers = #tpu.dot_dimension_numbers<[1], [0], [0], [1], [0, 0, 1, 1], [], []>} : vector<8x12xf32>, vector<12x32xf32>, vector<8x32xf32> -> vector<8x32xf32>
    %cst_124 = arith.constant 0.000000e+00 : f32
    %160 = vector.broadcast %cst_124 : f32 to vector<8x32xf32>
    %161 = arith.maximumf %159, %160 : vector<8x32xf32>
    %cst_125 = arith.constant dense<0.000000e+00> : vector<8xf32>
    %162 = vector.multi_reduction <add>, %161, %cst_125 [1] : vector<8x32xf32> to vector<8xf32>
    %163 = vector.shape_cast %162 : vector<8xf32> to vector<8x1xf32>
    %cst_126 = arith.constant 3.200000e+01 : f32
    %164 = vector.broadcast %cst_126 : f32 to vector<8x1xf32>
    %165 = arith.divf %163, %164 : vector<8x1xf32>
    %166 = vector.broadcast %165 : vector<8x1xf32> to vector<8x32xf32>
    %167 = arith.subf %161, %166 : vector<8x32xf32>
    %168 = arith.mulf %167, %167 : vector<8x32xf32>
    %cst_127 = arith.constant dense<0.000000e+00> : vector<8xf32>
    %169 = vector.multi_reduction <add>, %168, %cst_127 [1] : vector<8x32xf32> to vector<8xf32>
    %170 = vector.shape_cast %169 : vector<8xf32> to vector<8x1xf32>
    %cst_128 = arith.constant 3.200000e+01 : f32
    %171 = vector.broadcast %cst_128 : f32 to vector<8x1xf32>
    %172 = arith.divf %170, %171 : vector<8x1xf32>
    %173 = vector.broadcast %165 : vector<8x1xf32> to vector<8x32xf32>
    %174 = arith.subf %161, %173 : vector<8x32xf32>
    %cst_129 = arith.constant 9.99999974E-6 : f32
    %175 = vector.broadcast %cst_129 : f32 to vector<8x1xf32>
    %176 = arith.addf %172, %175 : vector<8x1xf32>
    %177 = math.rsqrt %176 : vector<8x1xf32>
    %178 = vector.broadcast %177 : vector<8x1xf32> to vector<8x32xf32>
    %179 = arith.mulf %174, %178 : vector<8x32xf32>
    %180 = vector.broadcast %135 : vector<1x32xf32> to vector<8x32xf32>
    %181 = arith.mulf %179, %180 : vector<8x32xf32>
    %182 = vector.broadcast %137 : vector<1x32xf32> to vector<8x32xf32>
    %183 = arith.addf %181, %182 : vector<8x32xf32>
    %184 = vector.broadcast %143 : vector<8x1xf32> to vector<8x32xf32>
    %185 = arith.mulf %183, %184 : vector<8x32xf32>
    %186 = arith.addf %185, %77 : vector<8x32xf32>
    %c1_130 = arith.constant 1 : index
    %c0_131 = arith.constant 0 : index
    %c0_132 = arith.constant 0 : index
    %187 = vector.load %arg2[%c1_130, %c0_131, %c0_132] : memref<2x12x8xf32, #tpu.memory_space<vmem>>, vector<1x12x8xf32>
    %188 = vector.shape_cast %187 : vector<1x12x8xf32> to vector<12x8xf32>
    %c1_133 = arith.constant 1 : index
    %c0_134 = arith.constant 0 : index
    %c0_135 = arith.constant 0 : index
    %189 = vector.load %arg3[%c1_133, %c0_134, %c0_135] : memref<2x8x12xf32, #tpu.memory_space<vmem>>, vector<1x8x12xf32>
    %190 = vector.shape_cast %189 : vector<1x8x12xf32> to vector<8x12xf32>
    %c1_136 = arith.constant 1 : index
    %c0_137 = arith.constant 0 : index
    %c0_138 = arith.constant 0 : index
    %191 = vector.load %arg5[%c1_136, %c0_137, %c0_138] : memref<2x8x1xf32, #tpu.memory_space<vmem>>, vector<1x8x1xf32>
    %192 = vector.shape_cast %191 : vector<1x8x1xf32> to vector<8x1xf32>
    %cst_139 = arith.constant dense<0.000000e+00> : vector<8x32xf32>
    %193 = tpu.matmul %125, %127, %cst_139 {dimension_numbers = #tpu.dot_dimension_numbers<[1], [0], [0], [1], [0, 0, 1, 1], [], []>} : vector<8x32xf32>, vector<32x32xf32>, vector<8x32xf32> -> vector<8x32xf32>
    %194 = vector.broadcast %129 : vector<1x32xf32> to vector<8x32xf32>
    %195 = arith.addf %193, %194 : vector<8x32xf32>
    %cst_140 = arith.constant dense<0.000000e+00> : vector<12x32xf32>
    %196 = tpu.matmul %188, %195, %cst_140 {dimension_numbers = #tpu.dot_dimension_numbers<[1], [0], [0], [1], [0, 0, 1, 1], [], []>} : vector<12x8xf32>, vector<8x32xf32>, vector<12x32xf32> -> vector<12x32xf32>
    %cst_141 = arith.constant 0.000000e+00 : f32
    %197 = vector.broadcast %cst_141 : f32 to vector<12x32xf32>
    %198 = arith.maximumf %196, %197 : vector<12x32xf32>
    %199 = arith.addf %89, %198 : vector<12x32xf32>
    %c1_142 = arith.constant 1 : index
    %c0_143 = arith.constant 0 : index
    %c0_144 = arith.constant 0 : index
    %200 = vector.load %arg13[%c1_142, %c0_143, %c0_144] : memref<2x12x36xf32, #tpu.memory_space<vmem>>, vector<1x12x32xf32>
    %201 = vector.shape_cast %200 : vector<1x12x32xf32> to vector<12x32xf32>
    %202 = vector.shape_cast %199 : vector<12x32xf32> to vector<1x12x32xf32>
    tpu.vector_store %arg13[%c1_142, %c0_143, %c0_144], %202 {strides = array<i32>} : memref<2x12x36xf32, #tpu.memory_space<vmem>>, vector<1x12x32xf32>,
    %c1_145 = arith.constant 1 : index
    %c0_146 = arith.constant 0 : index
    %c0_147 = arith.constant 0 : index
    %203 = vector.load %arg13[%c1_145, %c0_146, %c0_147] : memref<2x12x36xf32, #tpu.memory_space<vmem>>, vector<1x12x36xf32>
    %204 = vector.shape_cast %203 : vector<1x12x36xf32> to vector<12x36xf32>
    %cst_148 = arith.constant dense<0.000000e+00> : vector<12x32xf32>
    %205 = tpu.matmul %204, %131, %cst_148 {dimension_numbers = #tpu.dot_dimension_numbers<[1], [0], [0], [1], [0, 0, 1, 1], [], []>} : vector<12x36xf32>, vector<36x32xf32>, vector<12x32xf32> -> vector<12x32xf32>
    %206 = vector.broadcast %133 : vector<1x32xf32> to vector<12x32xf32>
    %207 = arith.addf %205, %206 : vector<12x32xf32>
    %cst_149 = arith.constant dense<0.000000e+00> : vector<8x32xf32>
    %208 = tpu.matmul %190, %207, %cst_149 {dimension_numbers = #tpu.dot_dimension_numbers<[1], [0], [0], [1], [0, 0, 1, 1], [], []>} : vector<8x12xf32>, vector<12x32xf32>, vector<8x32xf32> -> vector<8x32xf32>
    %cst_150 = arith.constant 0.000000e+00 : f32
    %209 = vector.broadcast %cst_150 : f32 to vector<8x32xf32>
    %210 = arith.maximumf %208, %209 : vector<8x32xf32>
    %cst_151 = arith.constant dense<0.000000e+00> : vector<8xf32>
    %211 = vector.multi_reduction <add>, %210, %cst_151 [1] : vector<8x32xf32> to vector<8xf32>
    %212 = vector.shape_cast %211 : vector<8xf32> to vector<8x1xf32>
    %cst_152 = arith.constant 3.200000e+01 : f32
    %213 = vector.broadcast %cst_152 : f32 to vector<8x1xf32>
    %214 = arith.divf %212, %213 : vector<8x1xf32>
    %215 = vector.broadcast %214 : vector<8x1xf32> to vector<8x32xf32>
    %216 = arith.subf %210, %215 : vector<8x32xf32>
    %217 = arith.mulf %216, %216 : vector<8x32xf32>
    %cst_153 = arith.constant dense<0.000000e+00> : vector<8xf32>
    %218 = vector.multi_reduction <add>, %217, %cst_153 [1] : vector<8x32xf32> to vector<8xf32>
    %219 = vector.shape_cast %218 : vector<8xf32> to vector<8x1xf32>
    %cst_154 = arith.constant 3.200000e+01 : f32
    %220 = vector.broadcast %cst_154 : f32 to vector<8x1xf32>
    %221 = arith.divf %219, %220 : vector<8x1xf32>
    %222 = vector.broadcast %214 : vector<8x1xf32> to vector<8x32xf32>
    %223 = arith.subf %210, %222 : vector<8x32xf32>
    %cst_155 = arith.constant 9.99999974E-6 : f32
    %224 = vector.broadcast %cst_155 : f32 to vector<8x1xf32>
    %225 = arith.addf %221, %224 : vector<8x1xf32>
    %226 = math.rsqrt %225 : vector<8x1xf32>
    %227 = vector.broadcast %226 : vector<8x1xf32> to vector<8x32xf32>
    %228 = arith.mulf %223, %227 : vector<8x32xf32>
    %229 = vector.broadcast %135 : vector<1x32xf32> to vector<8x32xf32>
    %230 = arith.mulf %228, %229 : vector<8x32xf32>
    %231 = vector.broadcast %137 : vector<1x32xf32> to vector<8x32xf32>
    %232 = arith.addf %230, %231 : vector<8x32xf32>
    %233 = vector.broadcast %192 : vector<8x1xf32> to vector<8x32xf32>
    %234 = arith.mulf %232, %233 : vector<8x32xf32>
    %235 = arith.addf %234, %125 : vector<8x32xf32>
    %c0_156 = arith.constant 0 : index
    %c0_157 = arith.constant 0 : index
    %c0_158 = arith.constant 0 : index
    %236 = vector.load %arg12[%c0_156, %c0_157, %c0_158] : memref<2x8x32xf32, #tpu.memory_space<vmem>>, vector<1x8x32xf32>
    %237 = vector.shape_cast %236 : vector<1x8x32xf32> to vector<8x32xf32>
    %238 = vector.shape_cast %186 : vector<8x32xf32> to vector<1x8x32xf32>
    tpu.vector_store %arg12[%c0_156, %c0_157, %c0_158], %238 {strides = array<i32>} : memref<2x8x32xf32, #tpu.memory_space<vmem>>, vector<1x8x32xf32>,
    %c1_159 = arith.constant 1 : index
    %c0_160 = arith.constant 0 : index
    %c0_161 = arith.constant 0 : index
    %239 = vector.load %arg12[%c1_159, %c0_160, %c0_161] : memref<2x8x32xf32, #tpu.memory_space<vmem>>, vector<1x8x32xf32>
    %240 = vector.shape_cast %239 : vector<1x8x32xf32> to vector<8x32xf32>
    %241 = vector.shape_cast %235 : vector<8x32xf32> to vector<1x8x32xf32>
    tpu.vector_store %arg12[%c1_159, %c0_160, %c0_161], %241 {strides = array<i32>} : memref<2x8x32xf32, #tpu.memory_space<vmem>>, vector<1x8x32xf32>,
    return
  }
  func.func @transform_0(%arg0: i32) -> (i32, i32, i32) {
    %c0_i32 = arith.constant 0 : i32
    %c0_i32_0 = arith.constant 0 : i32
    %c0_i32_1 = arith.constant 0 : i32
    return %arg0, %c0_i32, %c0_i32_0 : i32, i32, i32
  }
  func.func @transform_1(%arg0: i32) -> (i32, i32, i32) {
    %c0_i32 = arith.constant 0 : i32
    %c0_i32_0 = arith.constant 0 : i32
    %c0_i32_1 = arith.constant 0 : i32
    return %arg0, %c0_i32, %c0_i32_0 : i32, i32, i32
  }
  func.func @transform_2(%arg0: i32) -> (i32, i32, i32) {
    %c0_i32 = arith.constant 0 : i32
    %c0_i32_0 = arith.constant 0 : i32
    %c0_i32_1 = arith.constant 0 : i32
    return %arg0, %c0_i32, %c0_i32_0 : i32, i32, i32
  }
  func.func @transform_3(%arg0: i32) -> (i32, i32, i32) {
    %c0_i32 = arith.constant 0 : i32
    %c0_i32_0 = arith.constant 0 : i32
    %c0_i32_1 = arith.constant 0 : i32
    return %arg0, %c0_i32, %c0_i32_0 : i32, i32, i32
  }
  func.func @transform_4(%arg0: i32) -> (i32, i32, i32) {
    %c0_i32 = arith.constant 0 : i32
    %c0_i32_0 = arith.constant 0 : i32
    %c0_i32_1 = arith.constant 0 : i32
    return %arg0, %c0_i32, %c0_i32_0 : i32, i32, i32
  }
  func.func @transform_5(%arg0: i32) -> (i32, i32, i32) {
    %c0_i32 = arith.constant 0 : i32
    %c0_i32_0 = arith.constant 0 : i32
    %c0_i32_1 = arith.constant 0 : i32
    %c0_i32_2 = arith.constant 0 : i32
    return %c0_i32, %c0_i32_0, %c0_i32_1 : i32, i32, i32
  }
  func.func @transform_6(%arg0: i32) -> (i32, i32, i32) {
    %c0_i32 = arith.constant 0 : i32
    %c0_i32_0 = arith.constant 0 : i32
    %c0_i32_1 = arith.constant 0 : i32
    %c0_i32_2 = arith.constant 0 : i32
    return %c0_i32, %c0_i32_0, %c0_i32_1 : i32, i32, i32
  }
  func.func @transform_7(%arg0: i32) -> (i32, i32, i32) {
    %c0_i32 = arith.constant 0 : i32
    %c0_i32_0 = arith.constant 0 : i32
    %c0_i32_1 = arith.constant 0 : i32
    %c0_i32_2 = arith.constant 0 : i32
    return %c0_i32, %c0_i32_0, %c0_i32_1 : i32, i32, i32
  }
  func.func @transform_8(%arg0: i32) -> (i32, i32, i32) {
    %c0_i32 = arith.constant 0 : i32
    %c0_i32_0 = arith.constant 0 : i32
    %c0_i32_1 = arith.constant 0 : i32
    %c0_i32_2 = arith.constant 0 : i32
    return %c0_i32, %c0_i32_0, %c0_i32_1 : i32, i32, i32
  }
  func.func @transform_9(%arg0: i32) -> (i32, i32, i32) {
    %c0_i32 = arith.constant 0 : i32
    %c0_i32_0 = arith.constant 0 : i32
    %c0_i32_1 = arith.constant 0 : i32
    %c0_i32_2 = arith.constant 0 : i32
    return %c0_i32, %c0_i32_0, %c0_i32_1 : i32, i32, i32
  }
  func.func @transform_10(%arg0: i32) -> (i32, i32, i32) {
    %c0_i32 = arith.constant 0 : i32
    %c0_i32_0 = arith.constant 0 : i32
    %c0_i32_1 = arith.constant 0 : i32
    %c0_i32_2 = arith.constant 0 : i32
    return %c0_i32, %c0_i32_0, %c0_i32_1 : i32, i32, i32
  }
  func.func @transform_11(%arg0: i32) -> (i32, i32, i32) {
    %c0_i32 = arith.constant 0 : i32
    %c0_i32_0 = arith.constant 0 : i32
    %c0_i32_1 = arith.constant 0 : i32
    return %arg0, %c0_i32, %c0_i32_0 : i32, i32, i32
  }
}

</mosaic_0001>

<bundles_post_ra>
// kernel: tpu_custom_call.1
= control target key start
LH: loop header
LB: loop body
LE: loop exit
PB: predicated region body
PF: predicated region fallthrough
CT: control target
= control target key end

     0   :  { %vm40_vm0 = vcmask 130048   ;;  %s1266_s0 = inlined_call_operand.vmem [shape: f32[2,8,16], index: 0, kind: input, shape index: {}]   ;;  %s1267_s1 = inlined_call_operand.vmem [shape: f32[2,12,8], index: 1, kind: input, shape index: {}]   ;;  %s1268_s2 = inlined_call_operand.vmem [shape: f32[2,8,12], index: 2, kind: input, shape index: {}]   ;;  %s1269_s3 = inlined_call_operand.vmem [shape: f32[2,12,4], index: 3, kind: input, shape index: {}]   ;;  %s1270_s4 = inlined_call_operand.vmem [shape: f32[2,8,1], index: 4, kind: input, shape index: {}]   ;;  %s1271_s5 = inlined_call_operand.vmem [shape: f32[2,32,32], index: 5, kind: input, shape index: {}]   ;;  %s1272_s6 = inlined_call_operand.vmem [shape: f32[2,1,32], index: 6, kind: input, shape index: {}]   ;;  %s1273_s7 = inlined_call_operand.vmem [shape: f32[2,36,32], index: 7, kind: input, shape index: {}]   ;;  %s1274_s8 = inlined_call_operand.vmem [shape: f32[2,1,32], index: 8, kind: input, shape index: {}]   ;;  %s1275_s9 = inlined_call_operand.vmem [shape: f32[2,1,32], index: 9, kind: input, shape index: {}]   ;;  %s1276_s10 = inlined_call_operand.vmem [shape: f32[2,1,32], index: 10, kind: input, shape index: {}]   ;;  %s1277_s11 = inlined_call_operand.hbm [shape: f32[2,8,32], index: 11, kind: output, shape index: {}]  }
   0x1   :  { %v950_v0 = vld [vmem:[%s1271_s5 + $0x18] sm:$0xff]  ;;  %v955_v1 = vld [vmem:[%s1271_s5 + $0x10] sm:$0xff]  ;;  %v961_v2 = vld [vmem:[%s1271_s5 + $0x8] sm:$0xff] }
   0x2   :  { %109 = vmatpush.msra.mxu0 %v950_v0  ;;  %v966_v3 = vld [vmem:[%s1271_s5] sm:$0xff] }
   0x3   :  { %v39_v4 = vld [vmem:[%s1266_s0] sm:$0xff] }
   0x4   :  { %110 = vmatpush.msra.mxu0 %v955_v1 }
   0x5   :  { %16 = vsyncpa [#allocation4], 0  ;;  %v974_v5 = vsel %vm40_vm0, %v39_v4, 0.0  ;;  %vm93_vm1 = vcmask 261120   ;;  %v42_v6 = vld [vmem:[%s1269_s3] sm:$0xff]  ;;  %s881_s29 = smov 32  }
   0x6   :  { %111 = vmatpush.msra.mxu0 %v961_v2  ;;  %46 = vrot.lane.b32.xlu0 %v42_v6, %s881_s29  ;;  %v43_v7 = vld [vmem:[%s1269_s3 + $0x8] sm:$0xf]  ;;  %v990_v8 = vld [vmem:[%s1272_s6] ss:$0 sm:$0xff]  ;;  %vm117_vm2 = vcmask 64512   ;;  %vm52_vm3 = vcmask 294144  }
   0x7   :  { %v996_v11 = vld [vmem:[%s1267_s1] sm:$0xff]  ;;  %v87_v12 = vld [vmem:[%s1267_s1 + $0x8] sm:$0xf]  ;;  %vm164_vm4 = vcmask 1043456   ;;  %v81_v15 = vld [vmem:[%s1273_s7 + $0x18] sm:$0xff]  ;;  %vm54_vm5 = vcmask 290048  }
   0x8   :  { %112 = vmatpush.msra.mxu0 %v966_v3  ;;  %v82_v14 = vld [vmem:[%s1273_s7 + $0x20] sm:$0xf]  ;;  %v80_v16 = vld [vmem:[%s1273_s7 + $0x10] sm:$0xff]  ;;  %v79_v17 = vld [vmem:[%s1273_s7 + $0x8] sm:$0xff]  ;;  %vm150_vm6 = vcmask 257024   ;;  %vm157_vm7 = vcmask 293888  }
   0x9   :  { %775 = vmatmul.msk.f32.vlgmr.msra.gmra.mxu0 %vm93_vm1, %v974_v5  ;;  %778 = vmatpush.msk.msra.mxu2 %vm164_vm4, %v82_v14  ;;  %v78_v19 = vld [vmem:[%s1273_s7] sm:$0xff]  ;;  %vm191_vm8 = vcmask 97280   ;;  %v772_v32 = vld [vmem:[%s1266_s0 + $0x8] sm:$0xff]  ;;  %v773_v34 = vld [vmem:[%s1269_s3 + $0x10] sm:$0xff]  ;;  %v882_v43 = vmov 32.0   ;;  %v883_v53 = vmov 0  }
   0xa   :  { %v1040_v27 = vld [vmem:[%s1274_s8] ss:$0 sm:$0xff]  ;;  %v1059_v33 = vsel %vm40_vm0, %v772_v32, 0.0  ;;  %64 = vrot.lane.b32.xlu1 %v773_v34, %s881_s29  ;;  %v774_v35 = vld [vmem:[%s1269_s3 + $0x18] sm:$0xf]  ;;  %v1077_v41 = vld [vmem:[%s1267_s1 + $0x10] sm:$0xff]  ;;  %845 = vrcp.f32 %v882_v43  ;;  %834 = vset.pattern.permute.xlu0 %v883_v53 }
   0xb   :  { %180 = vmatpush.msra.mxu2 %v81_v15  ;;  %v1048_v31 = vld [vmem:[%s1268_s2] sm:$0xff]  ;;  %v784_v42 = vld [vmem:[%s1267_s1 + $0x18] sm:$0xf]  ;;  %835 = vset.pattern.permute.xlu2 %v883_v53  ;;  %v804_v43 = vld [vmem:[%s1273_s7 + $0x48] sm:$0xf]  ;;  %s760_s17 = sshll.u32 %s1277_s11, 4  ;;  %s761_s17 = int_to_ptr.hbm [resolvable:$true] %s760_s17 }
   0xc   :  { %v1090_v51 = vld [vmem:[%s1270_s4] sm:$0xff]  ;;  %836 = vset.pattern.permute.xlu1 %v883_v53  ;;  %s885_s18 = smov 128   ;;  %s886_s19 = smov 8  }
   0xd   :  { %181 = vmatpush.msra.mxu2 %v80_v16  ;;  %v795_v4 = vld [vmem:[%s1271_s5 + $0x20] sm:$0xff] }
   0xe   :  { %48 = vrot.lane.b32.xlu0 %v43_v7, %s881_s29 }
   0xf   :  { %182 = vmatpush.msra.mxu2 %v79_v17 }
  0x10   :  { %v846_v44 = vpop.eup %845 }
  0x11   :  { %183 = vmatpush.msra.mxu2 %v78_v19  ;;  %v223_v45 = vmul.f32 32.0, %v846_v44  ;;  %vm227_vm9 = vweird.f32 %v846_v44 }
  0x12   :  { %66 = vrot.lane.b32.xlu1 %v774_v35, %s881_s29 }
  0x13   :  { %v224_v46 = vsub.f32 1.0, %v223_v45  ;;  %v801_v45 = vld [vmem:[%s1273_s7 + $0x30] sm:$0xff] }
  0x15   :  { %v225_v48 = vmul.f32 %v846_v44, %v224_v46  ;;  %v800_v46 = vld [vmem:[%s1273_s7 + $0x28] sm:$0xff] }
  0x16   :  { %258 = vperm.xlu0 %834, %v1090_v51  }
  0x17   :  { %v226_v49 = vadd.f32 %v846_v44, %v225_v48 }
  0x19   :  { %v1092_v52 = vsel %vm227_vm9, %v846_v44, %v226_v49  ;;  %v802_v44 = vld [vmem:[%s1273_s7 + $0x38] sm:$0xff] }
  0x78   :  { %v47_v13 = vpop.permute.xlu0 %46 }
  0x79   :  { %53 = vst.msk [vmem:[#allocation2] sm:$0xff] %vm52_vm3, %v47_v13 }
  0x7c   :  { %v65_v47 = vpop.permute.xlu1 %64 }
  0x7d   :  { %71 = vst.msk [vmem:[#allocation2 + $0x10] sm:$0xff] %vm52_vm3, %v65_v47 }
  0x80   :  { %v49_v18 = vpop.permute.xlu0 %48 }
  0x81   :  { %55 = vst.msk [vmem:[#allocation2 + $0x8] sm:$0xf] %vm54_vm5, %v49_v18  ;;  %v1138_v18 = vld [vmem:[%s1276_s10] ss:$0 sm:$0xff] }
  0x84   :  { %v67_v50 = vpop.permute.xlu1 %66 }
  0x85   :  { %72 = vst.msk [vmem:[#allocation2 + $0x18] sm:$0xf] %vm54_vm5, %v67_v50 }
  0x86   :  { %v114_v9 = vpop.f32.mrf.mxu0 }
  0x87   :  { %v115_v10 = vadd.f32 %v990_v8, %v114_v9 }
  0x89   :  { %139 = vmatpush.msra.mxu1 %v115_v10 }
  0x8a   :  { %776 = vmatmul.msk.f32.vlgmr.msra.gmra.mxu1 %vm117_vm2, %v996_v11 }
  0x8b   :  { %790 = vmatpush.msk.msrb.mxu1 %vm164_vm4, %v82_v14 }
  0x8d   :  { %346 = vmatpush.msrb.mxu1 %v81_v15 }
  0x8f   :  { %347 = vmatpush.msrb.mxu1 %v80_v16  ;;  %v1133_v16 = vld [vmem:[%s1275_s9] ss:$0 sm:$0xff] }
  0x91   :  { %348 = vmatpush.msrb.mxu1 %v79_v17 }
  0x92   :  { %777 = vmatmul.msk.f32.gmra.mxu1 %vm117_vm2, %v87_v12 }
  0x93   :  { %349 = vmatpush.msrb.mxu1 %v78_v19 }
 0x107   :  { %v1023_v20 = vpop.f32.mrf.mxu1 }
 0x108   :  { %v147_v21 = vmax.f32 %v1023_v20, 0.0  ;;  %v1202_v20 = vld [vmem:[%s1270_s4 + $0x8] sm:$0xff] }
 0x10a   :  { %149 = vst.msk [vmem:[#allocation2] sm:$0xff] %vm93_vm1, %v147_v21 }
 0x10f   :  { %v1029_v22 = vpop.f32.mrf.mxu1 }
 0x110   :  { %v148_v23 = vmax.f32 %v1029_v22, 0.0 }
 0x111   :  { %v152_v24 = vld [vmem:[#allocation2] sm:$0xff] }
 0x112   :  { %151 = vst.msk [vmem:[#allocation2 + $0x8] sm:$0xf] %vm150_vm6, %v148_v23  ;;  %779 = vmatmul.msk.f32.vlgmr.msra.gmra.mxu2 %vm157_vm7, %v152_v24 }
 0x119   :  { %v153_v25 = vld [vmem:[#allocation2 + $0x8] sm:$0xf] }
 0x11a   :  { %780 = vmatmul.msk.f32.gmra.mxu2 %vm157_vm7, %v153_v25  ;;  %v259_v25 = vpop.permute.xlu0 %258 }
 0x195   :  { %v185_v26 = vpop.f32.mrf.mxu2 }
 0x196   :  { %v186_v30 = vadd.f32 %v1040_v27, %v185_v26 }
 0x19d   :  { %v188_v28 = vpop.f32.mrf.mxu2 }
 0x19e   :  { %v189_v29 = vadd.f32 %v1040_v27, %v188_v28 }
 0x1a0   :  { %781 = vmatpush.msk.msra.mxu3 %vm164_vm4, %v189_v29 }
 0x1a2   :  { %213 = vmatpush.msra.mxu3 %v186_v30 }
 0x1a3   :  { %782 = vmatmul.msk.f32.vlgmr.msra.gmra.mxu3 %vm191_vm8, %v1048_v31 }
 0x1a4   :  { %285 = vmatpush.msrb.mxu3 %v950_v0 }
 0x1a6   :  { %286 = vmatpush.msrb.mxu3 %v955_v1  ;;  %v1114_v1 = vld [vmem:[%s1271_s5 + $0x38] sm:$0xff] }
 0x1a7   :  { %456 = vmatpush.msrb.mxu2 %v1114_v1 }
 0x1a8   :  { %287 = vmatpush.msrb.mxu3 %v961_v2  ;;  %v1119_v2 = vld [vmem:[%s1271_s5 + $0x30] sm:$0xff] }
 0x1a9   :  { %457 = vmatpush.msrb.mxu2 %v1119_v2 }
 0x1aa   :  { %288 = vmatpush.msrb.mxu3 %v966_v3  ;;  %v796_v3 = vld [vmem:[%s1271_s5 + $0x28] sm:$0xff] }
 0x1ab   :  { %787 = vmatmul.msk.f32.vlgmr.msrb.gmra.mxu3 %vm93_vm1, %v1059_v33  ;;  %458 = vmatpush.msrb.mxu2 %v796_v3 }
 0x1ad   :  { %459 = vmatpush.msrb.mxu2 %v795_v4 }
 0x1af   :  { %823 = vmatpush.msk.msra.mxu2 %vm164_vm4, %v804_v43 }
 0x226   :  { %v215_v36 = vpop.f32.mrf.mxu3 }
 0x227   :  { %v218_v37 = vmax.f32 %v215_v36, 0.0  ;;  %v1153_v36 = vld [vmem:[%s1268_s2 + $0x8] sm:$0xff] }
 0x229   :  { %v219_v38 = vsel %vm93_vm1, %v218_v37, 0.0 }
 0x22a   :  { %220 = vadd.xlane.f32.xlu2 %v219_v38 }
 0x22e   :  { %v290_v39 = vpop.f32.mrf.mxu3 }
 0x22f   :  { %v291_v40 = vadd.f32 %v990_v8, %v290_v39 }
 0x231   :  { %314 = vmatpush.msrb.mxu0 %v291_v40 }
 0x232   :  { %788 = vmatmul.msk.f32.vlgmr.msrb.gmra.mxu0 %vm117_vm2, %v1077_v41 }
 0x233   :  { %811 = vmatpush.msk.msra.mxu0 %vm164_vm4, %v804_v43 }
 0x23a   :  { %789 = vmatmul.msk.f32.gmra.mxu0 %vm117_vm2, %v784_v42 }
 0x29d   :  { %v221_v54 = vpop.xlane.xlu2 %220 }
 0x29e   :  { %v229_v55 = vmul.f32 %v1092_v52, %v221_v54 }
 0x2a0   :  { %v230_v56 = vsub.f32 %v218_v37, %v229_v55 }
 0x2a2   :  { %v231_v57 = vmul.f32 %v230_v56, %v230_v56 }
 0x2a4   :  { %v232_v58 = vsel %vm93_vm1, %v231_v57, 0.0 }
 0x2a5   :  { %233 = vadd.xlane.f32.xlu2 %v232_v58 }
 0x2af   :  { %v1097_v59 = vpop.f32.mrf.mxu0 }
 0x2b0   :  { %v322_v60 = vmax.f32 %v1097_v59, 0.0 }
 0x2b2   :  { %324 = vst.msk [vmem:[#allocation2 + $0x10] sm:$0xff] %vm93_vm1, %v322_v60 }
 0x2b7   :  { %v1103_v61 = vpop.f32.mrf.mxu0 }
 0x2b8   :  { %v323_v62 = vmax.f32 %v1103_v61, 0.0 }
 0x2b9   :  { %v326_v63 = vld [vmem:[#allocation2 + $0x10] sm:$0xff] }
 0x2ba   :  { %325 = vst.msk [vmem:[#allocation2 + $0x18] sm:$0xf] %vm150_vm6, %v323_v62  ;;  %791 = vmatmul.msk.f32.vlgmr.msrb.gmra.mxu1 %vm157_vm7, %v326_v63 }
 0x2c1   :  { %v327_v0 = vld [vmem:[#allocation2 + $0x18] sm:$0xf] }
 0x2c2   :  { %792 = vmatmul.msk.f32.gmra.mxu1 %vm157_vm7, %v327_v0 }
 0x318   :  { %v234_v6 = vpop.xlane.xlu2 %233 }
 0x319   :  { %v235_v7 = vmul.f32 %v234_v6, %v1092_v52 }
 0x31b   :  { %v236_v8 = vadd.f32 1e-05, %v235_v7 }
 0x31d   :  { %847 = vrsqrt.f32 %v236_v8  ;;  %vm243_vm11 = vweird.f32 %v236_v8 }
 0x323   :  { %v848_v9 = vpop.eup %847 }
 0x324   :  { %v238_v10 = vmul.f32 %v848_v9, %v236_v8  ;;  %vm244_vm10 = vweird.f32 %v848_v9 }
 0x325   :  { %vm245_vm12 = vmor %vm243_vm11, %vm244_vm10 }
 0x326   :  { %v239_v12 = vmul.f32 %v848_v9, %v238_v10 }
 0x328   :  { %v240_v13 = vmul.f32 0.5, %v239_v12 }
 0x32a   :  { %v241_v14 = vsub.f32 1.5, %v240_v13 }
 0x32c   :  { %v242_v15 = vmul.f32 %v848_v9, %v241_v14  ;;  %v1210_v14 = vld [vmem:[%s1274_s8 + $0x1] ss:$0 sm:$0xff] }
 0x32e   :  { %v246_v17 = vsel %vm245_vm12, %v848_v9, %v242_v15 }
 0x32f   :  { %v247_v19 = vmul.f32 %v246_v17, %v230_v56 }
 0x331   :  { %v251_v24 = vmul.f32 %v1133_v16, %v247_v19 }
 0x333   :  { %v255_v26 = vadd.f32 %v1138_v18, %v251_v24 }
 0x335   :  { %v261_v28 = vmul.f32 %v259_v25, %v255_v26 }
 0x337   :  { %v1143_v29 = vadd.f32 %v261_v28, %v974_v5  ;;  %v351_v30 = vpop.f32.mrf.mxu1  ;;  %v1160_v5 = vld [vmem:[%s1272_s6 + $0x1] ss:$0 sm:$0xff] }
 0x338   :  { %v352_v35 = vadd.f32 %v1040_v27, %v351_v30 }
 0x339   :  { %808 = vmatmul.msk.f32.vlgmr.msrb.gmra.mxu2 %vm93_vm1, %v1143_v29 }
 0x33f   :  { %v354_v32 = vpop.f32.mrf.mxu1 }
 0x340   :  { %v355_v34 = vadd.f32 %v1040_v27, %v354_v32  ;;  %v435_v27 = vld [vmem:[%s1267_s1 + $0x8] sm:$0xf] }
 0x342   :  { %793 = vmatpush.msk.msra.mxu3 %vm164_vm4, %v355_v34 }
 0x344   :  { %378 = vmatpush.msra.mxu3 %v352_v35 }
 0x345   :  { %794 = vmatmul.msk.f32.vlgmr.msra.gmra.mxu3 %vm191_vm8, %v1153_v36 }
 0x3bc   :  { %v461_v37 = vpop.f32.mrf.mxu2 }
 0x3bd   :  { %v462_v38 = vadd.f32 %v1160_v5, %v461_v37 }
 0x3bf   :  { %485 = vmatpush.msrb.mxu3 %v462_v38 }
 0x3c0   :  { %809 = vmatmul.msk.f32.vlgmr.msrb.gmra.mxu3 %vm117_vm2, %v996_v11  ;;  %v803_v11 = vld [vmem:[%s1273_s7 + $0x40] sm:$0xff] }
 0x3c1   :  { %525 = vmatpush.msra.mxu0 %v803_v11  ;;  %682 = vmatpush.msra.mxu2 %v803_v11 }
 0x3c3   :  { %526 = vmatpush.msra.mxu0 %v802_v44  ;;  %683 = vmatpush.msra.mxu2 %v802_v44 }
 0x3c5   :  { %527 = vmatpush.msra.mxu0 %v801_v45  ;;  %684 = vmatpush.msra.mxu2 %v801_v45 }
 0x3c7   :  { %528 = vmatpush.msra.mxu0 %v800_v46  ;;  %685 = vmatpush.msra.mxu2 %v800_v46 }
 0x3c8   :  { %v380_v39 = vpop.f32.mrf.mxu3  ;;  %810 = vmatmul.msk.f32.gmra.mxu3 %vm117_vm2, %v435_v27 }
 0x3c9   :  { %v383_v40 = vmax.f32 %v380_v39, 0.0  ;;  %619 = vmatpush.msrb.mxu0 %v1114_v1 }
 0x3cb   :  { %v384_v42 = vsel %vm93_vm1, %v383_v40, 0.0  ;;  %620 = vmatpush.msrb.mxu0 %v1119_v2 }
 0x3cc   :  { %385 = vadd.xlane.f32.xlu1 %v384_v42 }
 0x3cd   :  { %621 = vmatpush.msrb.mxu0 %v796_v3 }
 0x3cf   :  { %622 = vmatpush.msrb.mxu0 %v795_v4 }
 0x43f   :  { %v386_v47 = vpop.xlane.xlu1 %385 }
 0x440   :  { %v387_v48 = vmul.f32 %v386_v47, %v1092_v52 }
 0x442   :  { %v388_v49 = vsub.f32 %v383_v40, %v387_v48 }
 0x443   :  { %v487_v50 = vpop.f32.mrf.mxu3 }
 0x444   :  { %v493_v53 = vmax.f32 %v487_v50, 0.0  ;;  %v389_v54 = vmul.f32 %v388_v49, %v388_v49 }
 0x446   :  { %v495_v55 = vadd.f32 %v493_v53, %v147_v21  ;;  %v390_v56 = vsel %vm93_vm1, %v389_v54, 0.0  ;;  %v844_v54 = vld [vmem:[%s1276_s10 + $0x1] ss:$0 sm:$0xff] }
 0x447   :  { %391 = vadd.xlane.f32.xlu2 %v390_v56 }
 0x448   :  { %497 = vst.msk [vmem:[#allocation2] sm:$0xff] %vm93_vm1, %v495_v55 }
 0x44b   :  { %v490_v57 = vpop.f32.mrf.mxu3 }
 0x44c   :  { %v494_v58 = vmax.f32 %v490_v57, 0.0 }
 0x44e   :  { %v496_v63 = vadd.f32 %v494_v58, %v148_v23 }
 0x44f   :  { %v499_v0 = vld [vmem:[#allocation2] sm:$0xff] }
 0x450   :  { %498 = vst.msk [vmem:[#allocation2 + $0x8] sm:$0xf] %vm150_vm6, %v496_v63  ;;  %812 = vmatmul.msk.f32.vlgmr.msra.gmra.mxu0 %vm157_vm7, %v499_v0 }
 0x457   :  { %v500_v1 = vld [vmem:[#allocation2 + $0x8] sm:$0xf] }
 0x458   :  { %813 = vmatmul.msk.f32.gmra.mxu0 %vm157_vm7, %v500_v1 }
 0x45f   :  { %410 = vperm.xlu2 %835, %v1202_v20  }
 0x4ba   :  { %v392_v21 = vpop.xlane.xlu2 %391 }
 0x4bb   :  { %v393_v2 = vmul.f32 %v392_v21, %v1092_v52 }
 0x4bd   :  { %v394_v22 = vadd.f32 1e-05, %v393_v2 }
 0x4bf   :  { %849 = vrsqrt.f32 %v394_v22  ;;  %vm401_vm14 = vweird.f32 %v394_v22 }
 0x4c2   :  { %v411_v15 = vpop.permute.xlu2 %410 }
 0x4c5   :  { %v850_v23 = vpop.eup %849 }
 0x4c6   :  { %v396_v3 = vmul.f32 %v850_v23, %v394_v22  ;;  %vm402_vm13 = vweird.f32 %v850_v23 }
 0x4c7   :  { %vm403_vm15 = vmor %vm401_vm14, %vm402_vm13 }
 0x4c8   :  { %v397_v4 = vmul.f32 %v850_v23, %v396_v3 }
 0x4ca   :  { %v398_v6 = vmul.f32 0.5, %v397_v4 }
 0x4cc   :  { %v399_v7 = vsub.f32 1.5, %v398_v6 }
 0x4cd   :  { %v530_v8 = vpop.f32.mrf.mxu0 }
 0x4ce   :  { %v400_v9 = vmul.f32 %v850_v23, %v399_v7  ;;  %v531_v26 = vadd.f32 %v1210_v14, %v530_v8 }
 0x4d0   :  { %v404_v10 = vsel %vm403_vm15, %v850_v23, %v400_v9 }
 0x4d1   :  { %v405_v12 = vmul.f32 %v404_v10, %v388_v49 }
 0x4d3   :  { %v406_v13 = vmul.f32 %v1133_v16, %v405_v12 }
 0x4d5   :  { %v533_v17 = vpop.f32.mrf.mxu0  ;;  %v407_v19 = vadd.f32 %v1138_v18, %v406_v13 }
 0x4d6   :  { %v534_v24 = vadd.f32 %v1210_v14, %v533_v17 }
 0x4d7   :  { %v413_v25 = vmul.f32 %v411_v15, %v407_v19 }
 0x4d8   :  { %814 = vmatpush.msk.msra.mxu1 %vm164_vm4, %v534_v24 }
 0x4d9   :  { %v1217_v28 = vadd.f32 %v413_v25, %v1059_v33  ;;  %v817_v33 = vld [vmem:[%s1267_s1 + $0x18] sm:$0xf] }
 0x4da   :  { %557 = vmatpush.msra.mxu1 %v531_v26 }
 0x4db   :  { %815 = vmatmul.msk.f32.vlgmr.msra.gmra.mxu1 %vm191_vm8, %v1048_v31  ;;  %820 = vmatmul.msk.f32.vlgmr.msrb.gmra.mxu0 %vm93_vm1, %v1217_v28 }
 0x558   :  { %v559_v16 = vpop.f32.mrf.mxu1  ;;  %v624_v30 = vpop.f32.mrf.mxu0 }
 0x559   :  { %v562_v18 = vmax.f32 %v559_v16, 0.0  ;;  %v625_v32 = vadd.f32 %v1160_v5, %v624_v30 }
 0x55b   :  { %648 = vmatpush.msrb.mxu1 %v625_v32  ;;  %v563_v34 = vsel %vm93_vm1, %v562_v18, 0.0 }
 0x55c   :  { %564 = vadd.xlane.f32.xlu0 %v563_v34  ;;  %821 = vmatmul.msk.f32.vlgmr.msrb.gmra.mxu1 %vm117_vm2, %v1077_v41 }
 0x564   :  { %822 = vmatmul.msk.f32.gmra.mxu1 %vm117_vm2, %v817_v33 }
 0x570   :  { %595 = vperm.xlu0 %834, %v1090_v51  }
 0x5cf   :  { %v565_v31 = vpop.xlane.xlu0 %564 }
 0x5d0   :  { %v566_v35 = vmul.f32 %v565_v31, %v1092_v52 }
 0x5d2   :  { %v567_v37 = vsub.f32 %v562_v18, %v566_v35 }
 0x5d4   :  { %v568_v5 = vmul.f32 %v567_v37, %v567_v37 }
 0x5d6   :  { %v569_v38 = vsel %vm93_vm1, %v568_v5, 0.0 }
 0x5d7   :  { %570 = vadd.xlane.f32.xlu1 %v569_v38 }
 0x5d9   :  { %v650_v27 = vpop.f32.mrf.mxu1 }
 0x5da   :  { %v656_v39 = vmax.f32 %v650_v27, 0.0 }
 0x5dc   :  { %v658_v41 = vadd.f32 %v656_v39, %v322_v60 }
 0x5de   :  { %660 = vst.msk [vmem:[#allocation2 + $0x10] sm:$0xff] %vm93_vm1, %v658_v41 }
 0x5e1   :  { %v653_v40 = vpop.f32.mrf.mxu1 }
 0x5e2   :  { %v657_v42 = vmax.f32 %v653_v40, 0.0  ;;  %v596_v57 = vpop.permute.xlu0 %595 }
 0x5e4   :  { %v659_v51 = vadd.f32 %v657_v42, %v323_v62  ;;  %v843_v62 = vld [vmem:[%s1275_s9 + $0x1] ss:$0 sm:$0xff]  ;;  %s884_s9 = smov [#allocation3]  }
 0x5e5   :  { %v662_v43 = vld [vmem:[#allocation2 + $0x10] sm:$0xff]  ;;  %s758_s10 = sshll.u32 %s884_s9, 4  ;;  %s759_s10 = int_to_ptr.vmem [resolvable:$true] %s758_s10 }
 0x5e6   :  { %661 = vst.msk [vmem:[#allocation2 + $0x18] sm:$0xf] %vm150_vm6, %v659_v51  ;;  %824 = vmatmul.msk.f32.vlgmr.msra.gmra.mxu2 %vm157_vm7, %v662_v43 }
 0x5ed   :  { %v663_v11 = vld [vmem:[#allocation2 + $0x18] sm:$0xf] }
 0x5ee   :  { %825 = vmatmul.msk.f32.gmra.mxu2 %vm157_vm7, %v663_v11 }
 0x64a   :  { %v571_v44 = vpop.xlane.xlu1 %570 }
 0x64b   :  { %v572_v45 = vmul.f32 %v571_v44, %v1092_v52 }
 0x64d   :  { %v573_v59 = vadd.f32 1e-05, %v572_v45 }
 0x64f   :  { %851 = vrsqrt.f32 %v573_v59  ;;  %vm580_vm2 = vweird.f32 %v573_v59 }
 0x655   :  { %v852_v60 = vpop.eup %851 }
 0x656   :  { %v575_v46 = vmul.f32 %v852_v60, %v573_v59  ;;  %vm581_vm0 = vweird.f32 %v852_v60 }
 0x657   :  { %vm582_vm3 = vmor %vm580_vm2, %vm581_vm0 }
 0x658   :  { %v576_v47 = vmul.f32 %v852_v60, %v575_v46 }
 0x65a   :  { %v577_v48 = vmul.f32 0.5, %v576_v47 }
 0x65c   :  { %v578_v49 = vsub.f32 1.5, %v577_v48 }
 0x65e   :  { %v579_v61 = vmul.f32 %v852_v60, %v578_v49 }
 0x660   :  { %v583_v50 = vsel %vm582_vm3, %v852_v60, %v579_v61 }
 0x661   :  { %v584_v53 = vmul.f32 %v583_v50, %v567_v37 }
 0x663   :  { %v588_v55 = vmul.f32 %v843_v62, %v584_v53 }
 0x665   :  { %v592_v56 = vadd.f32 %v844_v54, %v588_v55 }
 0x667   :  { %v598_v58 = vmul.f32 %v596_v57, %v592_v56 }
 0x669   :  { %v687_v63 = vpop.f32.mrf.mxu2  ;;  %v599_v0 = vadd.f32 %v598_v58, %v1143_v29 }
 0x66a   :  { %v688_v2 = vadd.f32 %v1210_v14, %v687_v63 }
 0x66b   :  { %751 = vst.msk [vmem:[#allocation3] sm:$0xff] %vm93_vm1, %v599_v0 }
 0x671   :  { %v690_v1 = vpop.f32.mrf.mxu2 }
 0x672   :  { %v691_v21 = vadd.f32 %v1210_v14, %v690_v1 }
 0x674   :  { %826 = vmatpush.msk.msra.mxu3 %vm164_vm4, %v691_v21 }
 0x676   :  { %714 = vmatpush.msra.mxu3 %v688_v2 }
 0x677   :  { %827 = vmatmul.msk.f32.vlgmr.msra.gmra.mxu3 %vm191_vm8, %v1153_v36 }
 0x6fa   :  { %v716_v22 = vpop.f32.mrf.mxu3 }
 0x6fb   :  { %v719_v23 = vmax.f32 %v716_v22, 0.0 }
 0x6fd   :  { %v720_v3 = vsel %vm93_vm1, %v719_v23, 0.0 }
 0x6fe   :  { %721 = vadd.xlane.f32.xlu2 %v720_v3 }
 0x771   :  { %v722_v4 = vpop.xlane.xlu2 %721 }
 0x772   :  { %v723_v29 = vmul.f32 %v722_v4, %v1092_v52 }
 0x774   :  { %v724_v6 = vsub.f32 %v719_v23, %v723_v29 }
 0x776   :  { %v725_v7 = vmul.f32 %v724_v6, %v724_v6 }
 0x778   :  { %v726_v8 = vsel %vm93_vm1, %v725_v7, 0.0 }
 0x779   :  { %727 = vadd.xlane.f32.xlu1 %v726_v8 }
 0x792   :  { %746 = vperm.xlu1 %836, %v1202_v20  }
 0x7ec   :  { %v728_v9 = vpop.xlane.xlu1 %727 }
 0x7ed   :  { %v729_v10 = vmul.f32 %v728_v9, %v1092_v52 }
 0x7ef   :  { %v730_v12 = vadd.f32 1e-05, %v729_v10 }
 0x7f1   :  { %853 = vrsqrt.f32 %v730_v12  ;;  %vm737_vm5 = vweird.f32 %v730_v12 }
 0x7f7   :  { %v854_v36 = vpop.eup %853 }
 0x7f8   :  { %v732_v13 = vmul.f32 %v854_v36, %v730_v12  ;;  %vm738_vm4 = vweird.f32 %v854_v36 }
 0x7f9   :  { %vm739_vm6 = vmor %vm737_vm5, %vm738_vm4 }
 0x7fa   :  { %v733_v14 = vmul.f32 %v854_v36, %v732_v13 }
 0x7fc   :  { %v734_v15 = vmul.f32 0.5, %v733_v14 }
 0x7fe   :  { %v735_v17 = vsub.f32 1.5, %v734_v15 }
 0x800   :  { %v736_v19 = vmul.f32 %v854_v36, %v735_v17 }
 0x802   :  { %v740_v24 = vsel %vm739_vm6, %v854_v36, %v736_v19 }
 0x803   :  { %v741_v25 = vmul.f32 %v740_v24, %v724_v6 }
 0x804   :  { %v747_v16 = vpop.permute.xlu1 %746 }
 0x805   :  { %v742_v26 = vmul.f32 %v843_v62, %v741_v25 }
 0x807   :  { %v743_v30 = vadd.f32 %v844_v54, %v742_v26 }
 0x809   :  { %v749_v52 = vmul.f32 %v747_v16, %v743_v30 }
 0x80b   :  { %v750_v20 = vadd.f32 %v749_v52, %v1217_v28 }
 0x80d   :  { %753 = vst.msk [vmem:[#allocation3 + $0x8] sm:$0xff] %vm93_vm1, %v750_v20 }
 0x80e   :  { %766 = dma.vmem_to_hbm [thread:$0]  %s759_s10, 256, %s761_s17, [#allocation4], %s885_s18, %s885_s18, %s886_s19  }
 0x80f   :  { %879 = dma.done.wait [#allocation4], 256  }
 0x810   :  { %880 = vsyncadd [#allocation4], 4294967040 }
 0x811   :  { %771 = vsyncpa [#allocation4], 1 }

</bundles_post_ra>
